<compile_context>
chip_gen: v6e
topology: v6e:2x2x1
jax: 0.10.0
libtpu: 0.0.40
codegen_flags: <defaults>
</compile_context>

<pallas_src>
import functools

import jax
import jax.numpy as jnp
from jax import lax
from jax.experimental import pallas as pl
from jax.experimental.pallas import tpu as pltpu

# MXU operand dtype; accumulation stays f32 via preferred_element_type.
_MXU_DTYPE = jnp.bfloat16


def _round_up(x, m):
    return (x + m - 1) // m * m


# --------------------------------------------------------------------------
# Kernels
# --------------------------------------------------------------------------
def _onepass_kernel(*refs, scale, dropout_p, sk_valid):
    """Fast path: whole K/V sequence in one tile -> plain softmax, no scratch.

    refs = (q, k, v[, keep_mask], o); q:(tq,D) k:(Sk,D) v:(Sk,Dv) o:(tq,Dv).
    """
    has_dropout = 0.0 < dropout_p < 1.0
    if has_dropout:
        q_ref, k_ref, v_ref, mask_ref, o_ref = refs
    else:
        q_ref, k_ref, v_ref, o_ref = refs
        mask_ref = None

    q = q_ref[...].astype(jnp.float32)
    if scale != 1.0:
        q = q * scale                       # fold scale into q: tq*D muls
    q = q.astype(_MXU_DTYPE)

    # Scores: contract last dims directly (no materialized k.T).
    s = lax.dot_general(
        q, k_ref[...].astype(_MXU_DTYPE),
        dimension_numbers=(((1,), (1,)), ((), ())),
        preferred_element_type=jnp.float32)

    if sk_valid is not None:                # static: only when K was padded
        col = lax.broadcasted_iota(jnp.int32, s.shape, 1)
        s = jnp.where(col < sk_valid, s, -jnp.inf)

    m = jnp.max(s, axis=-1, keepdims=True)
    p = jnp.exp(s - m)
    l = jnp.sum(p, axis=-1, keepdims=True)  # denominator uses un-dropped p

    if has_dropout:
        p = p * mask_ref[...].astype(jnp.float32)

    inv = pl.reciprocal(l, approx=True)
    if has_dropout:
        inv = inv * (1.0 / (1.0 - dropout_p))   # fold rescale into per-row inv

    out = jnp.dot(p.astype(_MXU_DTYPE), v_ref[...].astype(_MXU_DTYPE),
                  preferred_element_type=jnp.float32)
    o_ref[...] = (out * inv).astype(o_ref.dtype)


def _flash_kernel(*refs, scale, dropout_p, sk_valid, tk):
    """Online-softmax flash attention step over the Sk grid axis.

    refs = (q, k, v[, keep_mask], o, qs_sc, m_sc, l_sc, acc_sc).
    """
    has_dropout = 0.0 < dropout_p < 1.0
    if has_dropout:
        q_ref, k_ref, v_ref, mask_ref, o_ref, qs_sc, m_sc, l_sc, acc_sc = refs
    else:
        q_ref, k_ref, v_ref, o_ref, qs_sc, m_sc, l_sc, acc_sc = refs
        mask_ref = None

    ki = pl.program_id(2)

    @pl.when(ki == 0)
    def _init():
        # Hoisted once per q-tile: scale fold + bf16 cast of q.
        q = q_ref[...].astype(jnp.float32)
        if scale != 1.0:
            q = q * scale
        qs_sc[...] = q.astype(qs_sc.dtype)
        m_sc[...] = jnp.full(m_sc.shape, -jnp.inf, m_sc.dtype)
        l_sc[...] = jnp.zeros(l_sc.shape, l_sc.dtype)
        acc_sc[...] = jnp.zeros(acc_sc.shape, acc_sc.dtype)

    s = lax.dot_general(
        qs_sc[...], k_ref[...].astype(_MXU_DTYPE),
        dimension_numbers=(((1,), (1,)), ((), ())),
        preferred_element_type=jnp.float32)

    if sk_valid is not None:                # static: only when K was padded
        col = ki * tk + lax.broadcasted_iota(jnp.int32, s.shape, 1)
        s = jnp.where(col < sk_valid, s, -jnp.inf)

    m_prev = m_sc[...]
    m_new = jnp.maximum(m_prev, jnp.max(s, axis=-1, keepdims=True))
    alpha = jnp.exp(m_prev - m_new)
    p = jnp.exp(s - m_new)
    l_sc[...] = alpha * l_sc[...] + jnp.sum(p, axis=-1, keepdims=True)
    m_sc[...] = m_new

    if has_dropout:
        # Dropout acts after softmax: zero entries of p used for PV; the
        # denominator l keeps the full sum; 1/(1-p) applied at finalize.
        p = p * mask_ref[...].astype(jnp.float32)

    acc_sc[...] = alpha * acc_sc[...] + jnp.dot(
        p.astype(_MXU_DTYPE), v_ref[...].astype(_MXU_DTYPE),
        preferred_element_type=jnp.float32)

    @pl.when(ki == pl.num_programs(2) - 1)
    def _finalize():
        inv = pl.reciprocal(l_sc[...], approx=True)
        if has_dropout:
            inv = inv * (1.0 / (1.0 - dropout_p))
        o_ref[...] = (acc_sc[...] * inv).astype(o_ref.dtype)


# --------------------------------------------------------------------------
# Wrapper
# --------------------------------------------------------------------------
def sdpa_dropout(query, key, value, *, scale_factor=1.0, dropout_p=0.0,
                 dropout_mask=None, seed=0):
    """query: (B,H,Sq,D), key: (B,H,Sk,D), value: (B,H,Sk,Dv) -> (B,H,Sq,Dv).

    dropout_mask: optional keep-mask (1=keep, 0=drop) of shape (B,H,Sq,Sk);
    generated from `seed` if not supplied and 0 < dropout_p < 1.
    """
    B, H, Sq, D = query.shape
    Bk, Hk, Sk, Dk = key.shape
    Bv, Hv, Skv, Dv = value.shape
    assert (B, H) == (Bk, Hk) == (Bv, Hv)
    assert Dk == D and Skv == Sk

    if dropout_p >= 1.0:
        # F.dropout(p=1, training=True) zeros everything: skip all compute
        # and all Q/K/V DMAs entirely.
        return jnp.zeros((B, H, Sq, Dv), query.dtype)

    has_dropout = 0.0 < dropout_p < 1.0
    BH = B * H

    # ---- tile selection (zero-pad awkward extents; never "full extent") ----
    row_align = 8 if query.dtype.itemsize >= 4 else 16
    tq = 256 if Sq >= 256 else _round_up(Sq, row_align)
    tk = 512 if Sk >= 512 else _round_up(Sk, 128)
    Sq_pad = _round_up(Sq, tq)
    Sk_pad = _round_up(Sk, tk)
    sk_valid = Sk if Sk_pad != Sk else None

    q3 = query.reshape(BH, Sq, D)
    k3 = key.reshape(BH, Sk, D)
    v3 = value.reshape(BH, Sk, Dv)
    if Sq_pad != Sq:
        q3 = jnp.pad(q3, ((0, 0), (0, Sq_pad - Sq), (0, 0)))
    if Sk_pad != Sk:
        k3 = jnp.pad(k3, ((0, 0), (0, Sk_pad - Sk), (0, 0)))
        v3 = jnp.pad(v3, ((0, 0), (0, Sk_pad - Sk), (0, 0)))

    m3 = None
    if has_dropout:
        if dropout_mask is None:
            # TODO(synk): mask RNG stream is not bit-compatible with PyTorch.
            dropout_mask = jax.random.bernoulli(
                jax.random.PRNGKey(seed), 1.0 - dropout_p, (B, H, Sq, Sk))
        m3 = dropout_mask.reshape(BH, Sq, Sk).astype(jnp.float32)
        if Sq_pad != Sq or Sk_pad != Sk:
            m3 = jnp.pad(m3, ((0, 0), (0, Sq_pad - Sq), (0, Sk_pad - Sk)))

    num_q = Sq_pad // tq
    num_k = Sk_pad // tk

    if num_k == 1:
        # ---------- single-pass fast path (benchmark 128x128 shape) ----------
        in_specs = [
            pl.BlockSpec((None, tq, D), lambda bh, qi: (bh, qi, 0)),
            pl.BlockSpec((None, Sk_pad, D), lambda bh, qi: (bh, 0, 0)),
            pl.BlockSpec((None, Sk_pad, Dv), lambda bh, qi: (bh, 0, 0)),
        ]
        inputs = [q3, k3, v3]
        if has_dropout:
            in_specs.append(
                pl.BlockSpec((None, tq, Sk_pad), lambda bh, qi: (bh, qi, 0)))
            inputs.append(m3)

        kernel = functools.partial(
            _onepass_kernel, scale=float(scale_factor),
            dropout_p=float(dropout_p), sk_valid=sk_valid)

        out3 = pl.pallas_call(
            kernel,
            out_shape=jax.ShapeDtypeStruct((BH, Sq_pad, Dv), query.dtype),
            grid=(BH, num_q),
            in_specs=in_specs,
            out_specs=pl.BlockSpec((None, tq, Dv), lambda bh, qi: (bh, qi, 0)),
            compiler_params=pltpu.CompilerParams(
                dimension_semantics=("parallel", "parallel")),
        )(*inputs)
    else:
        # ---------- flash path: online softmax over the Sk grid axis ----------
        in_specs = [
            pl.BlockSpec((None, tq, D), lambda bh, qi, ki: (bh, qi, 0)),
            pl.BlockSpec((None, tk, D), lambda bh, qi, ki: (bh, ki, 0)),
            pl.BlockSpec((None, tk, Dv), lambda bh, qi, ki: (bh, ki, 0)),
        ]
        inputs = [q3, k3, v3]
        if has_dropout:
            in_specs.append(
                pl.BlockSpec((None, tq, tk), lambda bh, qi, ki: (bh, qi, ki)))
            inputs.append(m3)

        kernel = functools.partial(
            _flash_kernel, scale=float(scale_factor),
            dropout_p=float(dropout_p), sk_valid=sk_valid, tk=tk)

        out3 = pl.pallas_call(
            kernel,
            out_shape=jax.ShapeDtypeStruct((BH, Sq_pad, Dv), query.dtype),
            grid=(BH, num_q, num_k),
            in_specs=in_specs,
            out_specs=pl.BlockSpec(
                (None, tq, Dv), lambda bh, qi, ki: (bh, qi, 0)),
            scratch_shapes=[
                pltpu.VMEM((tq, D), _MXU_DTYPE),    # scaled q (hoisted cast)
                pltpu.VMEM((tq, 1), jnp.float32),   # running max
                pltpu.VMEM((tq, 1), jnp.float32),   # running denominator
                pltpu.VMEM((tq, Dv), jnp.float32),  # output accumulator
            ],
            compiler_params=pltpu.CompilerParams(
                dimension_semantics=("parallel", "parallel", "arbitrary")),
        )(*inputs)

    out = out3[:, :Sq, :] if Sq_pad != Sq else out3
    return out.reshape(B, H, Sq, Dv)


# --------------------------------------------------------------------------
# Reference + tests
# --------------------------------------------------------------------------
def _reference(query, key, value, scale_factor, dropout_p, keep_mask=None):
    s = jnp.einsum("bhqd,bhkd->bhqk",
                   query.astype(jnp.float32), key.astype(jnp.float32))
    s = s * scale_factor
    p = jax.nn.softmax(s, axis=-1)
    if dropout_p >= 1.0:
        p = jnp.zeros_like(p)
    elif 0.0 < dropout_p < 1.0:
        assert keep_mask is not None
        p = p * keep_mask.astype(jnp.float32) / (1.0 - dropout_p)
    out = jnp.einsum("bhqk,bhkd->bhqd", p, value.astype(jnp.float32))
    return out.astype(query.dtype)


if __name__ == "__main__":
    # Module config from the PyTorch script.
    scale_factor = 1.0
    dropout_p = 1.0

    # Small shapes consistent with the module's 128x128 attention matrices
    # (the original script's query/key batch dims are broadcast-incompatible,
    # so we pick a consistent B*H=2, S=128, D=128).  The 0.3 scale keeps the
    # score variance ~1 so bf16 MXU rounding stays well inside tolerances.
    B, H, S, D = 1, 2, 128, 128
    k0, k1, k2 = jax.random.split(jax.random.PRNGKey(0), 3)
    query = 0.3 * jax.random.normal(k0, (B, H, S, D), dtype=jnp.float32)
    key = 0.3 * jax.random.normal(k1, (B, H, S, D), dtype=jnp.float32)
    value = 0.3 * jax.random.normal(k2, (B, H, S, D), dtype=jnp.float32)

    # 1) Module config: p = 1 -> statically zero output, no kernel launch.
    out = jax.block_until_ready(
        sdpa_dropout(query, key, value,
                     scale_factor=scale_factor, dropout_p=dropout_p))
    ref = _reference(query, key, value, scale_factor, dropout_p)
    assert out.shape == (B, H, S, D)
    assert jnp.allclose(out, ref), "mismatch (dropout_p=1)"

    # 2) p = 0: single-pass attention kernel vs JAX reference.
    out0 = jax.block_until_ready(
        sdpa_dropout(query, key, value,
                     scale_factor=scale_factor, dropout_p=0.0))
    ref0 = _reference(query, key, value, scale_factor, 0.0)
    assert jnp.allclose(out0, ref0, atol=2e-2, rtol=2e-2), "mismatch (p=0)"

    # 3) Non-trivial scale factor exercises the scale-fold path.
    outs = jax.block_until_ready(
        sdpa_dropout(query, key, value, scale_factor=0.125, dropout_p=0.0))
    refs = _reference(query, key, value, 0.125, 0.0)
    assert jnp.allclose(outs, refs, atol=2e-2, rtol=2e-2), "mismatch (scale)"

    # 4) 0 < p < 1: dropout via an explicit keep-mask shared with the reference.
    keep = jax.random.bernoulli(jax.random.PRNGKey(7), 0.5, (B, H, S, S))
    outh = jax.block_until_ready(
        sdpa_dropout(query, key, value, scale_factor=scale_factor,
                     dropout_p=0.5, dropout_mask=keep))
    refh = _reference(query, key, value, scale_factor, 0.5, keep_mask=keep)
    assert jnp.allclose(outh, refh, atol=2e-2, rtol=2e-2), "mismatch (p=0.5)"

    # 5) Long K/V (multiple k-tiles): flash online-softmax path.
    Sk_long = 1024
    k3_, k4_ = jax.random.split(jax.random.PRNGKey(3))
    key_l = 0.3 * jax.random.normal(k3_, (B, H, Sk_long, D), dtype=jnp.float32)
    val_l = 0.3 * jax.random.normal(k4_, (B, H, Sk_long, D), dtype=jnp.float32)
    outl = jax.block_until_ready(
        sdpa_dropout(query, key_l, val_l,
                     scale_factor=scale_factor, dropout_p=0.0))
    refl = _reference(query, key_l, val_l, scale_factor, 0.0)
    assert jnp.allclose(outl, refl, atol=2e-2, rtol=2e-2), "mismatch (flash)"

    # 6) Awkward K length (padding + in-kernel column masking).
    Sk_odd = 1000
    key_o = key_l[:, :, :Sk_odd, :]
    val_o = val_l[:, :, :Sk_odd, :]
    outo = jax.block_until_ready(
        sdpa_dropout(query, key_o, val_o,
                     scale_factor=scale_factor, dropout_p=0.0))
    refo = _reference(query, key_o, val_o, scale_factor, 0.0)
    assert jnp.allclose(outo, refo, atol=2e-2, rtol=2e-2), "mismatch (padded K)"

    print("KERNEL_OK")
</pallas_src>

<mosaic_0001>
module attributes {stable_mosaic.version = 11 : i64} {
  func.func @_onepass_kernel(%arg0: i32, %arg1: i32, %arg2: memref<1x128x128xf32, #tpu.memory_space<vmem>>, %arg3: memref<1x128x128xf32, #tpu.memory_space<vmem>>, %arg4: memref<1x128x128xf32, #tpu.memory_space<vmem>>, %arg5: memref<1x128x128xf32, #tpu.memory_space<vmem>>) attributes {dimension_semantics = [#tpu.dimension_semantics<parallel>, #tpu.dimension_semantics<parallel>], iteration_bounds = array<i64: 2, 1>, scalar_prefetch = 0 : i64, scratch_operands = 0 : i64, tpu.core_type = #tpu.core_type<tc>, window_params = [{transform_indices = @transform_0, window_bounds = array<i64: 1, 128, 128>}, {transform_indices = @transform_1, window_bounds = array<i64: 1, 128, 128>}, {transform_indices = @transform_2, window_bounds = array<i64: 1, 128, 128>}, {transform_indices = @transform_3, window_bounds = array<i64: 1, 128, 128>}]} {
    %c0 = arith.constant 0 : index
    %c0_0 = arith.constant 0 : index
    %c0_1 = arith.constant 0 : index
    %0 = vector.load %arg2[%c0, %c0_0, %c0_1] : memref<1x128x128xf32, #tpu.memory_space<vmem>>, vector<1x128x128xf32>
    %1 = vector.shape_cast %0 : vector<1x128x128xf32> to vector<128x128xf32>
    %2 = arith.truncf %1 : vector<128x128xf32> to vector<128x128xbf16>
    %c0_2 = arith.constant 0 : index
    %c0_3 = arith.constant 0 : index
    %c0_4 = arith.constant 0 : index
    %3 = vector.load %arg3[%c0_2, %c0_3, %c0_4] : memref<1x128x128xf32, #tpu.memory_space<vmem>>, vector<1x128x128xf32>
    %4 = vector.shape_cast %3 : vector<1x128x128xf32> to vector<128x128xf32>
    %5 = arith.truncf %4 : vector<128x128xf32> to vector<128x128xbf16>
    %cst = arith.constant dense<0.000000e+00> : vector<128x128xf32>
    %6 = tpu.matmul %2, %5, %cst {dimension_numbers = #tpu.dot_dimension_numbers<[1], [1], [0], [0], [0, 0, 1, 0], [], []>} : vector<128x128xbf16>, vector<128x128xbf16>, vector<128x128xf32> -> vector<128x128xf32>
    %cst_5 = arith.constant dense<0xFF800000> : vector<128xf32>
    %7 = vector.multi_reduction <maximumf>, %6, %cst_5 [1] : vector<128x128xf32> to vector<128xf32>
    %8 = vector.shape_cast %7 : vector<128xf32> to vector<128x1xf32>
    %9 = vector.broadcast %8 : vector<128x1xf32> to vector<128x128xf32>
    %10 = arith.subf %6, %9 : vector<128x128xf32>
    %11 = math.exp %10 : vector<128x128xf32>
    %cst_6 = arith.constant dense<0.000000e+00> : vector<128xf32>
    %12 = vector.multi_reduction <add>, %11, %cst_6 [1] : vector<128x128xf32> to vector<128xf32>
    %13 = vector.shape_cast %12 : vector<128xf32> to vector<128x1xf32>
    %14 = tpu.reciprocal %13 {approx = true} : vector<128x1xf32> -> vector<128x1xf32>
    %15 = arith.truncf %11 : vector<128x128xf32> to vector<128x128xbf16>
    %c0_7 = arith.constant 0 : index
    %c0_8 = arith.constant 0 : index
    %c0_9 = arith.constant 0 : index
    %16 = vector.load %arg4[%c0_7, %c0_8, %c0_9] : memref<1x128x128xf32, #tpu.memory_space<vmem>>, vector<1x128x128xf32>
    %17 = vector.shape_cast %16 : vector<1x128x128xf32> to vector<128x128xf32>
    %18 = arith.truncf %17 : vector<128x128xf32> to vector<128x128xbf16>
    %cst_10 = arith.constant dense<0.000000e+00> : vector<128x128xf32>
    %19 = tpu.matmul %15, %18, %cst_10 {dimension_numbers = #tpu.dot_dimension_numbers<[1], [0], [0], [1], [0, 0, 1, 1], [], []>} : vector<128x128xbf16>, vector<128x128xbf16>, vector<128x128xf32> -> vector<128x128xf32>
    %20 = vector.broadcast %14 : vector<128x1xf32> to vector<128x128xf32>
    %21 = arith.mulf %19, %20 : vector<128x128xf32>
    %c0_11 = arith.constant 0 : index
    %c0_12 = arith.constant 0 : index
    %c0_13 = arith.constant 0 : index
    %22 = vector.load %arg5[%c0_11, %c0_12, %c0_13] : memref<1x128x128xf32, #tpu.memory_space<vmem>>, vector<1x128x128xf32>
    %23 = vector.shape_cast %22 : vector<1x128x128xf32> to vector<128x128xf32>
    %24 = vector.shape_cast %21 : vector<128x128xf32> to vector<1x128x128xf32>
    tpu.vector_store %arg5[%c0_11, %c0_12, %c0_13], %24 {strides = array<i32>} : memref<1x128x128xf32, #tpu.memory_space<vmem>>, vector<1x128x128xf32>,
    return
  }
  func.func @transform_0(%arg0: i32, %arg1: i32) -> (i32, i32, i32) {
    %c0_i32 = arith.constant 0 : i32
    %c0_i32_0 = arith.constant 0 : i32
    return %arg0, %arg1, %c0_i32 : i32, i32, i32
  }
  func.func @transform_1(%arg0: i32, %arg1: i32) -> (i32, i32, i32) {
    %c0_i32 = arith.constant 0 : i32
    %c0_i32_0 = arith.constant 0 : i32
    %c0_i32_1 = arith.constant 0 : i32
    return %arg0, %c0_i32, %c0_i32_0 : i32, i32, i32
  }
  func.func @transform_2(%arg0: i32, %arg1: i32) -> (i32, i32, i32) {
    %c0_i32 = arith.constant 0 : i32
    %c0_i32_0 = arith.constant 0 : i32
    %c0_i32_1 = arith.constant 0 : i32
    return %arg0, %c0_i32, %c0_i32_0 : i32, i32, i32
  }
  func.func @transform_3(%arg0: i32, %arg1: i32) -> (i32, i32, i32) {
    %c0_i32 = arith.constant 0 : i32
    %c0_i32_0 = arith.constant 0 : i32
    return %arg0, %arg1, %c0_i32 : i32, i32, i32
  }
}

</mosaic_0001>

<bundles_post_ra>
// kernel: tpu_custom_call.1
= control target key start
LH: loop header
LB: loop body
LE: loop exit
PB: predicated region body
PF: predicated region fallthrough
CT: control target
= control target key end

     0   :  { %s1686_s0 = inlined_call_operand.hbm [shape: f32[2,128,128], index: 0, kind: input, shape index: {}]   ;;  %s1687_s1 = inlined_call_operand.hbm [shape: f32[2,128,128], index: 1, kind: input, shape index: {}]   ;;  %s1688_s2 = inlined_call_operand.hbm [shape: f32[2,128,128], index: 2, kind: input, shape index: {}]   ;;  %s1689_s3 = inlined_call_operand.hbm [shape: f32[2,128,128], index: 3, kind: output, shape index: {}]  }
   0x1   :  { %1695 = sst [smem:[#allocation15_spill]] %s1687_s1 }
   0x2   :  { %8 = vsyncpa [#allocation3], 0 }
   0x3   :  { %10 = vsyncpa [#allocation3 + $0x1], 0 }
   0x4   :  { %11 = vsyncpa [#allocation6], 0 }
   0x5   :  { %13 = vsyncpa [#allocation6 + $0x1], 0 }
   0x6   :  { %14 = vsyncpa [#allocation4], 0 }
   0x7   :  { %16 = vsyncpa [#allocation4 + $0x1], 0  ;;  %s1328_s12 = smov 0   ;;  %s1330_s13 = smov 0  }
   0x8   :  { %s1332_s14 = smov 0   ;;  %s1334_s15 = smov 0  }
   0x9   :  { %s1336_s16 = smov 0   ;;  %s1338_s17 = smov 0  }
   0xa LB: > { %1696 = sst [smem:[#allocation12_spill]] %s1294_s16  ;;  %s1359_s18 = sadd.s32 4294967295, %s1298_s17   ;;  %s1298_s17 = sphi %s1338_s17, %s22_s17   ;;  %s1294_s16 = sphi %s1336_s16, %s1711_s16   ;;  %s1290_s15 = sphi %s1334_s15, %s1710_s15   ;;  %s1286_s14 = sphi %s1332_s14, %s1714_s14   ;;  %s1282_s13 = sphi %s1330_s13, %s1713_s13   ;;  %s1278_s12 = sphi %s1328_s12, %s1712_s12  }
   0xb   : > { %s868_s19 = sadd.s32 4294967294, %s1298_s17   ;;  %s34_s20 = sadd.s32 1, %s1294_s16 }
   0xc   : > { %s43_s21 = sadd.s32 1, %s1286_s14  ;;  %p36_p0 = scmp.ge.s32.totalorder %s34_s20, 2 }
   0xd   : > { %p50_p1 = scmp.ne.s32.totalorder %s1286_s14, %s1282_s13  ;;  %p51_p2 = scmp.eq.s32.totalorder %s1298_s17, 0 }
   0xe   : > { %p56_p3 = scmp.ne.s32.totalorder %s1282_s13, %s1278_s12  ;;  %s1716_s20 = smov (%p36_p0, %s34_s20), 0 }
   0xf   : > { %1697 = sst [smem:[#allocation13_spill]] %s1716_s20  ;;  %p1371_p4 = por %p51_p2, %p50_p1 }
  0x10   : > { %p57_p5 = scmp.eq.s32.totalorder %s1359_s18, 0  ;;  %s38_s23 = ssub.s32 %s1294_s16, %s1716_s20 }
  0x11   : > { %p134_p6 = scmp.eq.s32.totalorder %s1359_s18, 1  ;;  %p41_p7 = scmp.eq.s32.totalorder %s38_s23, 0 }
  0x12   : > { %p1379_p8 = por %p57_p5, %p56_p3  ;;  %p140_p10 = scmp.eq.s32.totalorder %s868_s19, 1 }
  0x13   : > { %p1383_p9 = por %p134_p6, %p50_p1  ;;  %p1012_p13 = scmp.lt.s32.totalorder %s1298_s17, 2 }
  0x14   : > { %s1388_s26 = scalar_select %p41_p7, %s1286_s14, %s43_s21  }
  0x15   : > { %p1390_p11 = por %p140_p10, %p56_p3  ;;  %s1690_s28 = sand.u32 1, %s1286_s14  }
  0x16   : > { %1701 = sst [smem:[#allocation14_spill]] %s1388_s26  ;;  %s1399_s29 = sshll.u32 %s1690_s28, 7 }
  0x17   : > { %s1402_s30 = sshll.u32 %s1294_s16, 11  ;;  %p1406_p0 = pnand %p1012_p13, %p1371_p4 }
  0x18   : > { %s183_s5 = sand.u32 1, %s1298_s17   ;;  %s1704_s1 = sld [smem:[#allocation15_spill]] }
  0x19   : > { %s187_s9 = scalar_lea.vmem [#allocation5], %s1399_s29  ;;  %p880_p1 = scmp.ge.s32.totalorder %s1298_s17, 1 }
  0x1a   : > { %s194_s10 = sshll.u32 %s187_s9, 4  ;;  %p223_p2 = scmp.lt.s32.totalorder %s1298_s17, 3  ;;  %s195_s10 = int_to_ptr.vmem [resolvable:$true] %s194_s10 }
  0x1b   : > { %s1418_s11 = scalar_lea.sflag [#allocation6], %s183_s5  ;;  %p1132_p3 = pneg %p1406_p0 }
  0x1c   : > { %s1143_s19 = scalar_lea.vmem %s195_s10, 2048  ;;  %s1300_s21 = smov [#allocation5]  }
  0x1d   : > { %p1144_p4 = scmp.ne.s32.totalorder %s195_s10, %s1143_s19  ;;  %s1148_s22 = sshll.u32 %s1300_s21, 4  ;;  %s1149_s22 = int_to_ptr.vmem [resolvable:$false] %s1148_s22 }
  0x1e   : > { %s193_s8 = scalar_lea.hbm %s1704_s1, %s1402_s30  ;;  %s1150_s23 = scalar_lea.vmem %s1149_s22, 4096 }
  0x1f   : > { %p1146_p5 = pnand %p1144_p4, %p1132_p3  ;;  %p1151_p7 = scmp.lt.s32.totalorder %s195_s10, %s1149_s22 }
  0x20   : > { %p1152_p10 = scmp.lt.s32.totalorder %s1150_s23, %s1143_s19 }
  0x21   : > { %p1147_p6 = pneg %p1146_p5 }
  0x22   : > { %p1153_p13 = por %p1152_p10, %p1151_p7 }
  0x24   : > { %p1154_p12 = pnand %p1153_p13, %p1147_p6 }
  0x26   : > { %1157 = shalt.err (!%p1154_p12)
}
  0x27   : > { %s1693_s6 = smov 128   ;;  %s1302_s5 = smov 8  }
  0x28   : > { %1004 = dma.hbm_to_vmem [thread:$0]  (!%p1406_p0), %s193_s8, 2048, %s195_s10, %s1418_s11, %s1693_s6, %s1693_s6, %s1302_s5  }
  0x29   : > { %p1435_p4 = pnand %p880_p1, %p223_p2  ;;  %s172_s21 = scalar_lea.hbm %s1686_s0, %s1402_s30 }
  0x2a   : > { %s164_s22 = scalar_lea.vmem [#allocation2], %s1399_s29  ;;  %s214_s20 = scalar_lea.hbm %s1688_s2, %s1402_s30 }
  0x2b   : > { %s173_s23 = sshll.u32 %s164_s22, 4  ;;  %s1706_s16 = sand.u32 1, %s1286_s14   ;;  %s174_s23 = int_to_ptr.vmem [resolvable:$true] %s173_s23 }
  0x2c   : > { %s161_s26 = scalar_lea.sflag [#allocation3], %s1706_s16  ;;  %s1171_s8 = scalar_lea.vmem %s174_s23, 2048 }
  0x2d   : > { %p1172_p12 = scmp.ne.s32.totalorder %s174_s23, %s1171_s8  ;;  %s1303_s10 = smov [#allocation2]  }
  0x2e   : > { %s1176_s6 = sshll.u32 %s1303_s10, 4  ;;  %s1177_s6 = int_to_ptr.vmem [resolvable:$false] %s1176_s6 }
  0x2f   : > { %p1174_p1 = pnand %p1172_p12, %p1132_p3  ;;  %s1178_s9 = scalar_lea.vmem %s1177_s6, 4096 }
  0x30   : > { %p1179_p5 = scmp.lt.s32.totalorder %s174_s23, %s1177_s6  ;;  %p1180_p6 = scmp.lt.s32.totalorder %s1178_s9, %s1171_s8 }
  0x31   : > { %p1175_p2 = pneg %p1174_p1 }
  0x32   : > { %p1181_p7 = por %p1180_p6, %p1179_p5 }
  0x34   : > { %p1182_p10 = pnand %p1181_p7, %p1175_p2 }
  0x36   : > { %1185 = shalt.err (!%p1182_p10)
}
  0x37   : > { %s1707_s1 = smov 128   ;;  %s208_s16 = scalar_lea.vmem [#allocation7], %s1399_s29 }
  0x38   : > { %1001 = dma.hbm_to_vmem [thread:$0]  (!%p1406_p0), %s172_s21, 2048, %s174_s23, %s161_s26, %s1707_s1, %s1707_s1, %s1302_s5  }
  0x39   : > { %s215_s28 = sshll.u32 %s208_s16, 4  ;;  %s1304_s6 = smov [#allocation7]   ;;  %s216_s28 = int_to_ptr.vmem [resolvable:$true] %s215_s28 }
  0x3a   : > { %s1199_s19 = scalar_lea.vmem %s216_s28, 2048  ;;  %s1204_s22 = sshll.u32 %s1304_s6, 4  ;;  %s1205_s22 = int_to_ptr.vmem [resolvable:$false] %s1204_s22 }
  0x3b   : > { %p1200_p13 = scmp.ne.s32.totalorder %s216_s28, %s1199_s19  ;;  %s1206_s8 = scalar_lea.vmem %s1205_s22, 4096 }
  0x3c   : > { %p1207_p2 = scmp.lt.s32.totalorder %s216_s28, %s1205_s22  ;;  %p1208_p5 = scmp.lt.s32.totalorder %s1206_s8, %s1199_s19 }
  0x3d   : > { %p1202_p12 = pnand %p1200_p13, %p1132_p3 }
  0x3e   : > { %p1209_p6 = por %p1208_p5, %p1207_p2 }
  0x3f   : > { %p1203_p1 = pneg %p1202_p12 }
  0x41   : > { %p1210_p7 = pnand %p1209_p6, %p1203_p1 }
  0x43   : > { %1213 = shalt.err (!%p1210_p7)
}
  0x44   : > { %1007 = dma.hbm_to_vmem [thread:$0]  (!%p1406_p0), %s214_s20, 2048, %s216_s28, %s1418_s11, %s1707_s1, %s1707_s1, %s1302_s5  }
  0x45   : > { %227 = sbr.rel (%p1435_p4) target bundleno = 745 (0x2e9), region = 32  ;;  %s1476_s21 = sand.u32 (!%p1435_p4), 1, %s1282_s13  }
  0x46   : > { %s1479_s4 = sshll.u32 (!%p1435_p4), %s1476_s21, 7  ;;  %s230_s23 = scalar_lea.sflag (!%p1435_p4), [#allocation3], %s1476_s21 }
  0x47   : > { %s1483_s10 = scalar_lea.vmem (!%p1435_p4), [#allocation2], %s1479_s4 }
  0x4a   : > { %1265 = dma.done.wait (%p1379_p8), %s230_s23, 2048  }
  0x4b   : > { %1267 = vsyncadd (%p1379_p8), %s230_s23, 4294965248  ;;  %s238_s20 = sand.u32 1, %s1359_s18   ;;  %s1491_s11 = scalar_lea.vmem [#allocation5], %s1479_s4 }
  0x4c   : > { %s239_s30 = scalar_lea.sflag [#allocation6], %s238_s20 }
  0x4d   : > { %1269 = dma.done.wait (%p1379_p8), %s239_s30, 4096  }
  0x4e   : > { %1271 = vsyncadd (%p1379_p8), %s239_s30, 4294963200  ;;  %v325_v0 = vld [vmem:[%s1491_s11 + $0x70] sm:$0xff]  ;;  %v326_v1 = vld [vmem:[%s1491_s11 + $0x78] sm:$0xff]  ;;  %s1530_s18 = scalar_lea.vmem [#allocation7], %s1479_s4  ;;  %s1613_s24 = scalar_lea.vmem [#allocation8], %s1479_s4 }
  0x4f   : > { %v323_v2 = vld [vmem:[%s1491_s11 + $0x60] sm:$0xff]  ;;  %v334_v3 = vpack.c.bf16 %v326_v1, %v325_v0  ;;  %v324_v4 = vld [vmem:[%s1491_s11 + $0x68] sm:$0xff]  ;;  %v321_v8 = vld [vmem:[%s1491_s11 + $0x50] sm:$0xff]  ;;  %s893_s5 = sshll.u32 %s1290_s15, 11  ;;  %s737_s7 = sshll.u32 %s1613_s24, 4  ;;  %s1636_s7 = int_to_ptr.vmem [resolvable:$true] %s737_s7 }
  0x50   : > { %v333_v5 = vpack.c.bf16 %v324_v4, %v323_v2  ;;  %v287_v6 = vld [vmem:[%s1483_s10] sm:$0xff]  ;;  %v288_v7 = vld [vmem:[%s1483_s10 + $0x8] sm:$0xff]  ;;  %v322_v9 = vld [vmem:[%s1491_s11 + $0x58] sm:$0xff]  ;;  %s1634_s16 = scalar_lea.hbm %s1689_s3, %s893_s5  ;;  %s722_s15 = scalar_lea.sflag [#allocation4], %s1476_s21 }
  0x51   : > { %926 = vmatprep.subr.bf16.mxu0 %v334_v3  ;;  %v303_v10 = vpack.c.bf16 %v288_v7, %v287_v6  ;;  %v332_v11 = vpack.c.bf16 %v322_v9, %v321_v8  ;;  %v319_v12 = vld [vmem:[%s1491_s11 + $0x40] sm:$0xff]  ;;  %v320_v13 = vld [vmem:[%s1491_s11 + $0x48] sm:$0xff]  ;;  %v317_v15 = vld [vmem:[%s1491_s11 + $0x30] sm:$0xff]  ;;  %s1214_s28 = scalar_lea.vmem %s1636_s7, 2048  ;;  %s1305_s19 = smov [#allocation8]  }
  0x52   : > { %927 = vmatpush3.bf16.xpose.msra.mxu0 %v334_v3  ;;  %v331_v14 = vpack.c.bf16 %v320_v13, %v319_v12  ;;  %v318_v16 = vld [vmem:[%s1491_s11 + $0x38] sm:$0xff]  ;;  %v315_v18 = vld [vmem:[%s1491_s11 + $0x20] sm:$0xff]  ;;  %v316_v19 = vld [vmem:[%s1491_s11 + $0x28] sm:$0xff]  ;;  %p1215_p8 = scmp.ne.s32.totalorder %s1636_s7, %s1214_s28  ;;  %s1218_s6 = sshll.u32 %s1305_s19, 4  ;;  %s1219_s6 = int_to_ptr.vmem [resolvable:$false] %s1218_s6 }
  0x53   : > { %928 = vmatprep.subr.bf16.mxu0 %v333_v5  ;;  %942 = vmatprep.mubr.bf16.mxu0 %v303_v10  ;;  %v330_v17 = vpack.c.bf16 %v318_v16, %v317_v15  ;;  %v329_v20 = vpack.c.bf16 %v316_v19, %v315_v18  ;;  %v313_v21 = vld [vmem:[%s1491_s11 + $0x10] sm:$0xff]  ;;  %v314_v22 = vld [vmem:[%s1491_s11 + $0x18] sm:$0xff]  ;;  %v311_v24 = vld [vmem:[%s1491_s11] sm:$0xff]  ;;  %s1220_s22 = scalar_lea.vmem %s1219_s6, 4096  ;;  %p1221_p4 = scmp.lt.s32.totalorder %s1636_s7, %s1219_s6 }
  0x54   : > { %v328_v23 = vpack.c.bf16 %v314_v22, %v313_v21  ;;  %v312_v25 = vld [vmem:[%s1491_s11 + $0x8] sm:$0xff]  ;;  %v289_v27 = vld [vmem:[%s1483_s10 + $0x10] sm:$0xff]  ;;  %v290_v28 = vld [vmem:[%s1483_s10 + $0x18] sm:$0xff]  ;;  %p1216_p0 = pnand %p1215_p8, %p1383_p9  ;;  %p1222_p10 = scmp.lt.s32.totalorder %s1220_s22, %s1214_s28 }
  0x55   : > { %v327_v26 = vpack.c.bf16 %v312_v25, %v311_v24  ;;  %v291_v29 = vld [vmem:[%s1483_s10 + $0x20] sm:$0xff]  ;;  %v292_v30 = vld [vmem:[%s1483_s10 + $0x28] sm:$0xff]  ;;  %v304_v31 = vpack.c.bf16 %v290_v28, %v289_v27  ;;  %v293_v33 = vld [vmem:[%s1483_s10 + $0x30] sm:$0xff] }
  0x56   : > { %v305_v32 = vpack.c.bf16 %v292_v30, %v291_v29  ;;  %v294_v34 = vld [vmem:[%s1483_s10 + $0x38] sm:$0xff]  ;;  %v295_v35 = vld [vmem:[%s1483_s10 + $0x40] sm:$0xff]  ;;  %v296_v36 = vld [vmem:[%s1483_s10 + $0x48] sm:$0xff]  ;;  %p1217_p3 = pneg %p1216_p0  ;;  %p1223_p13 = por %p1222_p10, %p1221_p4 }
  0x57   : > { %v306_v37 = vpack.c.bf16 %v294_v34, %v293_v33  ;;  %v307_v38 = vpack.c.bf16 %v296_v36, %v295_v35  ;;  %v297_v39 = vld [vmem:[%s1483_s10 + $0x50] sm:$0xff]  ;;  %v298_v40 = vld [vmem:[%s1483_s10 + $0x58] sm:$0xff]  ;;  %v299_v41 = vld [vmem:[%s1483_s10 + $0x60] sm:$0xff] }
  0x58   : > { %v300_v42 = vld [vmem:[%s1483_s10 + $0x68] sm:$0xff]  ;;  %v308_v43 = vpack.c.bf16 %v298_v40, %v297_v39  ;;  %v301_v45 = vld [vmem:[%s1483_s10 + $0x70] sm:$0xff]  ;;  %v302_v46 = vld [vmem:[%s1483_s10 + $0x78] sm:$0xff]  ;;  %p1224_p12 = pnand %p1223_p13, %p1217_p3 }
  0x59   : > { %v309_v44 = vpack.c.bf16 %v300_v42, %v299_v41  ;;  %v310_v47 = vpack.c.bf16 %v302_v46, %v301_v45  ;;  %v582_v48 = vld [vmem:[%s1530_s18 + $0x70] sm:$0xff]  ;;  %v583_v49 = vld [vmem:[%s1530_s18 + $0x78] sm:$0xff]  ;;  %v580_v50 = vld [vmem:[%s1530_s18 + $0x60] sm:$0xff] }
  0x5a   : > { %929 = vmatpush3.bf16.xpose.msra.mxu0 %v333_v5  ;;  %v591_v51 = vpack.c.bf16 %v583_v49, %v582_v48  ;;  %v581_v52 = vld [vmem:[%s1530_s18 + $0x68] sm:$0xff]  ;;  %v578_v60 = vld [vmem:[%s1530_s18 + $0x50] sm:$0xff]  ;;  %v579_v61 = vld [vmem:[%s1530_s18 + $0x58] sm:$0xff] }
  0x5b   : > { %930 = vmatprep.subr.bf16.mxu0 %v332_v11  ;;  %v590_v53 = vpack.c.bf16 %v581_v52, %v580_v50  ;;  %v589_v63 = vpack.c.bf16 %v579_v61, %v578_v60  ;;  %v576_v1 = vld [vmem:[%s1530_s18 + $0x40] sm:$0xff]  ;;  %v577_v2 = vld [vmem:[%s1530_s18 + $0x48] sm:$0xff]  ;;  %v574_v6 = vld [vmem:[%s1530_s18 + $0x30] sm:$0xff] }
  0x5c   : > { %958 = vmatprep.subr.bf16.mxu1 %v591_v51  ;;  %v588_v4 = vpack.c.bf16 %v577_v2, %v576_v1  ;;  %v575_v7 = vld [vmem:[%s1530_s18 + $0x38] sm:$0xff]  ;;  %v572_v12 = vld [vmem:[%s1530_s18 + $0x20] sm:$0xff]  ;;  %v573_v13 = vld [vmem:[%s1530_s18 + $0x28] sm:$0xff] }
  0x5d   : > { %959 = vmatpush3.bf16.msra.mxu1 %v591_v51  ;;  %v587_v9 = vpack.c.bf16 %v575_v7, %v574_v6  ;;  %v571_v18 = vld [vmem:[%s1530_s18 + $0x18] sm:$0xff]  ;;  %v568_v21 = vld [vmem:[%s1530_s18] sm:$0xff]  ;;  %v569_v22 = vld [vmem:[%s1530_s18 + $0x8] sm:$0xff] }
  0x5e   : > { %960 = vmatprep.subr.bf16.mxu1 %v590_v53 }
  0x61   : > { %961 = vmatpush3.bf16.msra.mxu1 %v590_v53 }
  0x62   : > { %931 = vmatpush3.bf16.xpose.msra.mxu0 %v332_v11  ;;  %962 = vmatprep.subr.bf16.mxu1 %v589_v63 }
  0x63   : > { %932 = vmatprep.subr.bf16.mxu0 %v331_v14 }
  0x65   : > { %963 = vmatpush3.bf16.msra.mxu1 %v589_v63 }
  0x66   : > { %964 = vmatprep.subr.bf16.mxu1 %v588_v4 }
  0x69   : > { %965 = vmatpush3.bf16.msra.mxu1 %v588_v4 }
  0x6a   : > { %933 = vmatpush3.bf16.xpose.msra.mxu0 %v331_v14  ;;  %966 = vmatprep.subr.bf16.mxu1 %v587_v9  ;;  %v586_v14 = vpack.c.bf16 %v573_v13, %v572_v12 }
  0x6b   : > { %934 = vmatprep.subr.bf16.mxu0 %v330_v17 }
  0x6d   : > { %967 = vmatpush3.bf16.msra.mxu1 %v587_v9 }
  0x6e   : > { %968 = vmatprep.subr.bf16.mxu1 %v586_v14 }
  0x71   : > { %969 = vmatpush3.bf16.msra.mxu1 %v586_v14 }
  0x72   : > { %935 = vmatpush3.bf16.xpose.msra.mxu0 %v330_v17  ;;  %v570_v17 = vld [vmem:[%s1530_s18 + $0x10] sm:$0xff] }
  0x73   : > { %936 = vmatprep.subr.bf16.mxu0 %v329_v20  ;;  %v585_v19 = vpack.c.bf16 %v571_v18, %v570_v17 }
  0x75   : > { %970 = vmatprep.subr.bf16.mxu1 %v585_v19 }
  0x76   : > { %971 = vmatpush3.bf16.msra.mxu1 %v585_v19 }
  0x7a   : > { %937 = vmatpush3.bf16.xpose.msra.mxu0 %v329_v20 }
  0x7b   : > { %938 = vmatprep.subr.bf16.mxu0 %v328_v23 }
  0x82   : > { %939 = vmatpush3.bf16.xpose.msra.mxu0 %v328_v23  ;;  %v584_v23 = vpack.c.bf16 %v569_v22, %v568_v21 }
  0x83   : > { %940 = vmatprep.subr.bf16.mxu0 %v327_v26 }
  0x84   : > { %972 = vmatprep.subr.bf16.mxu1 %v584_v23 }
  0x85   : > { %973 = vmatpush3.bf16.msra.mxu1 %v584_v23 }
  0x8a   : > { %941 = vmatpush3.bf16.xpose.msra.mxu0 %v327_v26 }
  0x91   : > { %943 = vmatmul.mubr.bf16.vlgmr.msra.gmra.mxu0 %v304_v31 }
  0x92   : > { %946 = vmatprep.mubr.bf16.mxu0 %v305_v32 }
  0x99   : > { %947 = vmatmul.mubr.bf16.gmra.mxu0 %v306_v37 }
  0x9a   : > { %950 = vmatprep.mubr.bf16.mxu0 %v307_v38 }
  0xa1   : > { %951 = vmatmul.mubr.bf16.gmra.mxu0 %v308_v43 }
  0xa2   : > { %954 = vmatprep.mubr.bf16.mxu0 %v309_v44 }
  0xa9   : > { %955 = vmatmul.mubr.bf16.gmra.mxu0 %v310_v47 }
 0x151   : > { %v1536_v54 = vpop.f32.mrf.mxu0 }
 0x152   : > { %436 = vmax.xlane.f32.xlu1 %v1536_v54 }
 0x153   : > { %v1539_v55 = vpop.f32.mrf.mxu0 }
 0x154   : > { %432 = vmax.xlane.f32.xlu0 %v1539_v55 }
 0x155   : > { %v1542_v56 = vpop.f32.mrf.mxu0 }
 0x156   : > { %438 = vmax.xlane.f32.xlu1 %v1542_v56 }
 0x157   : > { %v1545_v57 = vpop.f32.mrf.mxu0 }
 0x158   : > { %434 = vmax.xlane.f32.xlu0 %v1545_v57 }
 0x159   : > { %v1548_v58 = vpop.f32.mrf.mxu0 }
 0x15b   : > { %v1550_v59 = vpop.f32.mrf.mxu0 }
 0x15c   : > { %440 = vmax.xlane.f32.xlu0 %v1550_v59 }
 0x15d   : > { %v1555_v62 = vpop.f32.mrf.mxu0 }
 0x15f   : > { %v1557_v0 = vpop.f32.mrf.mxu0 }
 0x160   : > { %444 = vmax.xlane.f32.xlu0 %v1548_v58  ;;  %442 = vmax.xlane.f32.xlu1 %v1557_v0 }
 0x161   : > { %v1563_v3 = vpop.f32.mrf.mxu0 }
 0x163   : > { %v1565_v5 = vpop.f32.mrf.mxu0 }
 0x164   : > { %446 = vmax.xlane.f32.xlu1 %v1555_v62  ;;  %448 = vmax.xlane.f32.xlu0 %v1565_v5 }
 0x165   : > { %v1571_v8 = vpop.f32.mrf.mxu0 }
 0x167   : > { %v1573_v10 = vpop.f32.mrf.mxu0 }
 0x168   : > { %452 = vmax.xlane.f32.xlu0 %v1563_v3  ;;  %450 = vmax.xlane.f32.xlu1 %v1573_v10 }
 0x169   : > { %v1577_v11 = vpop.f32.mrf.mxu0 }
 0x16b   : > { %v1581_v15 = vpop.f32.mrf.mxu0 }
 0x16c   : > { %454 = vmax.xlane.f32.xlu1 %v1571_v8  ;;  %456 = vmax.xlane.f32.xlu0 %v1581_v15 }
 0x16d   : > { %v1585_v16 = vpop.f32.mrf.mxu0 }
 0x16f   : > { %v1589_v20 = vpop.f32.mrf.mxu0 }
 0x170   : > { %460 = vmax.xlane.f32.xlu0 %v1577_v11  ;;  %458 = vmax.xlane.f32.xlu1 %v1589_v20 }
 0x174   : > { %462 = vmax.xlane.f32.xlu1 %v1585_v16 }
 0x1db   : > { %v437_v24 = vpop.xlane.xlu1 %436 }
 0x1dc   : > { %v466_v25 = vsub.f32 %v1536_v54, %v437_v24 }
 0x1dd   : > { %v433_v26 = vpop.xlane.xlu0 %432 }
 0x1de   : > { %v484_v27 = vmul.f32 1.442695, %v466_v25  ;;  %v464_v28 = vsub.f32 %v1539_v55, %v433_v26 }
 0x1df   : > { %v439_v29 = vpop.xlane.xlu1 %438 }
 0x1e0   : > { %1066 = vpow2.f32 %v484_v27  ;;  %v480_v30 = vmul.f32 1.442695, %v464_v28  ;;  %v467_v31 = vsub.f32 %v1542_v56, %v439_v29 }
 0x1e1   : > { %v435_v32 = vpop.xlane.xlu0 %434 }
 0x1e2   : > { %v486_v33 = vmul.f32 1.442695, %v467_v31  ;;  %v465_v34 = vsub.f32 %v1545_v57, %v435_v32  ;;  %1068 = vpow2.f32 %v480_v30 }
 0x1e4   : > { %1070 = vpow2.f32 %v486_v33  ;;  %v482_v35 = vmul.f32 1.442695, %v465_v34 }
 0x1e5   : > { %v441_v36 = vpop.xlane.xlu0 %440 }
 0x1e6   : > { %1072 = vpow2.f32 %v482_v35  ;;  %v468_v37 = vsub.f32 %v1550_v59, %v441_v36 }
 0x1e8   : > { %v488_v38 = vmul.f32 1.442695, %v468_v37 }
 0x1e9   : > { %v445_v39 = vpop.xlane.xlu0 %444  ;;  %v443_v40 = vpop.xlane.xlu1 %442 }
 0x1ea   : > { %v470_v41 = vsub.f32 %v1548_v58, %v445_v39  ;;  %v469_v42 = vsub.f32 %v1557_v0, %v443_v40  ;;  %1074 = vpow2.f32 %v488_v38 }
 0x1ec   : > { %v492_v43 = vmul.f32 1.442695, %v470_v41  ;;  %v490_v44 = vmul.f32 1.442695, %v469_v42 }
 0x1ed   : > { %v1067_v45 = vpop.eup %1066  ;;  %v447_v46 = vpop.xlane.xlu1 %446 }
 0x1ee   : > { %v449_v47 = vpop.xlane.xlu0 %448  ;;  %1076 = vpow2.f32 %v492_v43  ;;  %v471_v48 = vsub.f32 %v1555_v62, %v447_v46  ;;  %516 = vadd.xlane.f32.xlu0 %v1067_v45 }
 0x1ef   : > { %v472_v49 = vsub.f32 %v1565_v5, %v449_v47  ;;  %1078 = vpow2.f32 %v490_v44  ;;  %v1069_v50 = vpop.eup %1068 }
 0x1f0   : > { %v494_v51 = vmul.f32 1.442695, %v471_v48 }
 0x1f1   : > { %v1071_v52 = vpop.eup %1070  ;;  %v496_v53 = vmul.f32 1.442695, %v472_v49  ;;  %v451_v55 = vpop.xlane.xlu1 %450 }
 0x1f2   : > { %v453_v54 = vpop.xlane.xlu0 %452  ;;  %1080 = vpow2.f32 %v494_v51  ;;  %v473_v57 = vsub.f32 %v1573_v10, %v451_v55  ;;  %512 = vadd.xlane.f32.xlu0 %v1069_v50  ;;  %518 = vadd.xlane.f32.xlu1 %v1071_v52  ;;  %v561_v0 = vpack.c.bf16 %v1071_v52, %v1067_v45 }
 0x1f3   : > { %v474_v56 = vsub.f32 %v1563_v3, %v453_v54  ;;  %v1073_v58 = vpop.eup %1072  ;;  %1082 = vpow2.f32 %v496_v53 }
 0x1f4   : > { %v498_v60 = vmul.f32 1.442695, %v473_v57  ;;  %v560_v61 = vpack.c.bf16 %v1073_v58, %v1069_v50 }
 0x1f5   : > { %v500_v59 = vmul.f32 1.442695, %v474_v56  ;;  %v455_v62 = vpop.xlane.xlu1 %454 }
 0x1f6   : > { %v457_v63 = vpop.xlane.xlu0 %456  ;;  %v475_v1 = vsub.f32 %v1571_v8, %v455_v62  ;;  %974 = vmatprep.mubr.bf16.mxu1 %v560_v61  ;;  %514 = vadd.xlane.f32.xlu1 %v1073_v58 }
 0x1f7   : > { %1084 = vpow2.f32 %v500_v59  ;;  %v476_v2 = vsub.f32 %v1581_v15, %v457_v63  ;;  %975 = vmatmul.mubr.bf16.vlgmr.msra.gmra.mxu1 %v561_v0  ;;  %v1075_v6 = vpop.eup %1074 }
 0x1f8   : > { %1086 = vpow2.f32 %v498_v60  ;;  %v502_v3 = vmul.f32 1.442695, %v475_v1 }
 0x1f9   : > { %v459_v5 = vpop.xlane.xlu1 %458  ;;  %v504_v7 = vmul.f32 1.442695, %v476_v2 }
 0x1fa   : > { %v461_v4 = vpop.xlane.xlu0 %460  ;;  %1088 = vpow2.f32 %v502_v3  ;;  %v477_v10 = vsub.f32 %v1589_v20, %v459_v5 }
 0x1fb   : > { %v478_v9 = vsub.f32 %v1577_v11, %v461_v4  ;;  %v1077_v12 = vpop.eup %1076  ;;  %1090 = vpow2.f32 %v504_v7 }
 0x1fc   : > { %v1079_v13 = vpop.eup %1078  ;;  %v506_v14 = vmul.f32 1.442695, %v477_v10  ;;  %524 = vadd.xlane.f32.xlu0 %v1077_v12 }
 0x1fd   : > { %v508_v8 = vmul.f32 1.442695, %v478_v9  ;;  %v463_v15 = vpop.xlane.xlu1 %462  ;;  %v562_v17 = vpack.c.bf16 %v1079_v13, %v1075_v6 }
 0x1fe   : > { %v479_v18 = vsub.f32 %v1585_v16, %v463_v15  ;;  %1092 = vpow2.f32 %v506_v14 }
 0x1ff   : > { %v1081_v19 = vpop.eup %1080  ;;  %978 = vmatprep.mubr.bf16.mxu1 %v562_v17  ;;  %1094 = vpow2.f32 %v508_v8 }
 0x200   : > { %v510_v21 = vmul.f32 1.442695, %v479_v18  ;;  %520 = vadd.xlane.f32.xlu0 %v1075_v6  ;;  %526 = vadd.xlane.f32.xlu1 %v1081_v19  ;;  %v563_v22 = vpack.c.bf16 %v1081_v19, %v1077_v12  ;;  %v1083_v11 = vpop.eup %1082 }
 0x202   : > { %1096 = vpow2.f32 %v510_v21  ;;  %979 = vmatmul.mubr.bf16.gmra.mxu1 %v563_v22 }
 0x204   : > { %v1085_v20 = vpop.eup %1084  ;;  %522 = vadd.xlane.f32.xlu1 %v1079_v13 }
 0x205   : > { %v1087_v23 = vpop.eup %1086  ;;  %532 = vadd.xlane.f32.xlu0 %v1085_v20 }
 0x206   : > { %v564_v24 = vpack.c.bf16 %v1087_v23, %v1083_v11 }
 0x207   : > { %v1089_v25 = vpop.eup %1088 }
 0x208   : > { %982 = vmatprep.mubr.bf16.mxu1 %v564_v24  ;;  %534 = vadd.xlane.f32.xlu1 %v1089_v25  ;;  %v565_v16 = vpack.c.bf16 %v1089_v25, %v1085_v20  ;;  %v1091_v26 = vpop.eup %1090 }
 0x209   : > { %528 = vadd.xlane.f32.xlu0 %v1083_v11 }
 0x20a   : > { %983 = vmatmul.mubr.bf16.gmra.mxu1 %v565_v16 }
 0x20b   : > { %v1093_v27 = vpop.eup %1092 }
 0x20c   : > { %530 = vadd.xlane.f32.xlu1 %v1087_v23  ;;  %v566_v28 = vpack.c.bf16 %v1093_v27, %v1091_v26  ;;  %v1095_v29 = vpop.eup %1094 }
 0x20d   : > { %536 = vadd.xlane.f32.xlu0 %v1091_v26 }
 0x20e   : > { %986 = vmatprep.mubr.bf16.mxu1 %v566_v28 }
 0x20f   : > { %v1097_v30 = vpop.eup %1096 }
 0x210   : > { %538 = vadd.xlane.f32.xlu1 %v1093_v27  ;;  %v567_v31 = vpack.c.bf16 %v1097_v30, %v1095_v29 }
 0x211   : > { %540 = vadd.xlane.f32.xlu0 %v1095_v29 }
 0x212   : > { %987 = vmatmul.mubr.bf16.gmra.mxu1 %v567_v31 }
 0x214   : > { %542 = vadd.xlane.f32.xlu1 %v1097_v30 }
 0x277   : > { %v517_v32 = vpop.xlane.xlu0 %516 }
 0x278   : > { %1098 = vrcp.f32 %v517_v32 }
 0x27b   : > { %v519_v33 = vpop.xlane.xlu1 %518  ;;  %v513_v34 = vpop.xlane.xlu0 %512 }
 0x27c   : > { %1100 = vrcp.f32 %v513_v34 }
 0x27d   : > { %1102 = vrcp.f32 %v519_v33 }
 0x27f   : > { %v515_v35 = vpop.xlane.xlu1 %514 }
 0x280   : > { %1104 = vrcp.f32 %v515_v35 }
 0x285   : > { %v525_v36 = vpop.xlane.xlu0 %524  ;;  %v1099_v43 = vpop.eup %1098 }
 0x286   : > { %1106 = vrcp.f32 %v525_v36 }
 0x289   : > { %v527_v37 = vpop.xlane.xlu1 %526  ;;  %v521_v38 = vpop.xlane.xlu0 %520 }
 0x28a   : > { %1108 = vrcp.f32 %v521_v38  ;;  %v1101_v46 = vpop.eup %1100 }
 0x28b   : > { %1110 = vrcp.f32 %v527_v37  ;;  %v1103_v50 = vpop.eup %1102 }
 0x28d   : > { %v523_v39 = vpop.xlane.xlu1 %522  ;;  %v1105_v54 = vpop.eup %1104 }
 0x28e   : > { %v533_v40 = vpop.xlane.xlu0 %532  ;;  %1112 = vrcp.f32 %v523_v39 }
 0x28f   : > { %1114 = vrcp.f32 %v533_v40 }
 0x291   : > { %v535_v41 = vpop.xlane.xlu1 %534 }
 0x292   : > { %v529_v42 = vpop.xlane.xlu0 %528 }
 0x293   : > { %1116 = vrcp.f32 %v529_v42  ;;  %v1107_v58 = vpop.eup %1106 }
 0x294   : > { %1118 = vrcp.f32 %v535_v41 }
 0x295   : > { %v531_v48 = vpop.xlane.xlu1 %530 }
 0x296   : > { %v537_v52 = vpop.xlane.xlu0 %536  ;;  %1120 = vrcp.f32 %v531_v48 }
 0x297   : > { %v1109_v62 = vpop.eup %1108 }
 0x298   : > { %v1111_v1 = vpop.eup %1110 }
 0x299   : > { %v539_v57 = vpop.xlane.xlu1 %538 }
 0x29a   : > { %v541_v59 = vpop.xlane.xlu0 %540 }
 0x29b   : > { %1122 = vrcp.f32 %v541_v59  ;;  %v1113_v5 = vpop.eup %1112 }
 0x29c   : > { %1124 = vrcp.f32 %v537_v52  ;;  %v1115_v9 = vpop.eup %1114 }
 0x29d   : > { %v543_v2 = vpop.xlane.xlu1 %542 }
 0x29e   : > { %1126 = vrcp.f32 %v543_v2 }
 0x29f   : > { %1128 = vrcp.f32 %v539_v57 }
 0x2a0   : > { %v1117_v13 = vpop.eup %1116 }
 0x2a1   : > { %v1119_v15 = vpop.eup %1118 }
 0x2a3   : > { %v1121_v19 = vpop.eup %1120 }
 0x2a8   : > { %v1123_v11 = vpop.eup %1122 }
 0x2a9   : > { %v1125_v24 = vpop.eup %1124 }
 0x2ab   : > { %v1127_v26 = vpop.eup %1126 }
 0x2ac   : > { %v1129_v29 = vpop.eup %1128 }
 0x2b7   : > { %v976_v44 = vpop.f32.mrf.mxu1 }
 0x2b8   : > { %v691_v45 = vmul.f32 %v1099_v43, %v976_v44 }
 0x2b9   : > { %v626_v47 = vpop.f32.mrf.mxu1 }
 0x2ba   : > { %707 = vst [vmem:[%s1613_s24 + $0x10] sm:$0xff] %v691_v45  ;;  %v689_v49 = vmul.f32 %v1101_v46, %v626_v47 }
 0x2bb   : > { %v977_v51 = vpop.f32.mrf.mxu1 }
 0x2bc   : > { %705 = vst [vmem:[%s1613_s24] sm:$0xff] %v689_v49  ;;  %v692_v53 = vmul.f32 %v1103_v50, %v977_v51 }
 0x2bd   : > { %v629_v55 = vpop.f32.mrf.mxu1 }
 0x2be   : > { %708 = vst [vmem:[%s1613_s24 + $0x18] sm:$0xff] %v692_v53  ;;  %v690_v56 = vmul.f32 %v1105_v54, %v629_v55 }
 0x2c0   : > { %706 = vst [vmem:[%s1613_s24 + $0x8] sm:$0xff] %v690_v56 }
 0x2c2   : > { %v980_v60 = vpop.f32.mrf.mxu1 }
 0x2c3   : > { %v695_v61 = vmul.f32 %v1107_v58, %v980_v60 }
 0x2c4   : > { %v642_v63 = vpop.f32.mrf.mxu1 }
 0x2c5   : > { %711 = vst [vmem:[%s1613_s24 + $0x30] sm:$0xff] %v695_v61  ;;  %v693_v0 = vmul.f32 %v1109_v62, %v642_v63 }
 0x2c6   : > { %v981_v3 = vpop.f32.mrf.mxu1 }
 0x2c7   : > { %709 = vst [vmem:[%s1613_s24 + $0x20] sm:$0xff] %v693_v0  ;;  %v696_v4 = vmul.f32 %v1111_v1, %v981_v3 }
 0x2c8   : > { %v645_v6 = vpop.f32.mrf.mxu1 }
 0x2c9   : > { %712 = vst [vmem:[%s1613_s24 + $0x38] sm:$0xff] %v696_v4  ;;  %v694_v7 = vmul.f32 %v1113_v5, %v645_v6 }
 0x2ca   : > { %v984_v10 = vpop.f32.mrf.mxu1 }
 0x2cb   : > { %710 = vst [vmem:[%s1613_s24 + $0x28] sm:$0xff] %v694_v7  ;;  %v699_v12 = vmul.f32 %v1115_v9, %v984_v10 }
 0x2cc   : > { %v658_v14 = vpop.f32.mrf.mxu1 }
 0x2cd   : > { %715 = vst [vmem:[%s1613_s24 + $0x50] sm:$0xff] %v699_v12  ;;  %v697_v8 = vmul.f32 %v1117_v13, %v658_v14 }
 0x2ce   : > { %v985_v17 = vpop.f32.mrf.mxu1 }
 0x2cf   : > { %713 = vst [vmem:[%s1613_s24 + $0x40] sm:$0xff] %v697_v8  ;;  %v700_v18 = vmul.f32 %v1119_v15, %v985_v17 }
 0x2d0   : > { %v661_v21 = vpop.f32.mrf.mxu1 }
 0x2d1   : > { %716 = vst [vmem:[%s1613_s24 + $0x58] sm:$0xff] %v700_v18  ;;  %v698_v22 = vmul.f32 %v1121_v19, %v661_v21 }
 0x2d2   : > { %v988_v20 = vpop.f32.mrf.mxu1 }
 0x2d3   : > { %714 = vst [vmem:[%s1613_s24 + $0x48] sm:$0xff] %v698_v22  ;;  %v703_v23 = vmul.f32 %v1123_v11, %v988_v20 }
 0x2d4   : > { %v674_v25 = vpop.f32.mrf.mxu1 }
 0x2d5   : > { %719 = vst [vmem:[%s1613_s24 + $0x70] sm:$0xff] %v703_v23  ;;  %v701_v16 = vmul.f32 %v1125_v24, %v674_v25 }
 0x2d6   : > { %v989_v27 = vpop.f32.mrf.mxu1 }
 0x2d7   : > { %717 = vst [vmem:[%s1613_s24 + $0x60] sm:$0xff] %v701_v16  ;;  %v704_v28 = vmul.f32 %v1127_v26, %v989_v27 }
 0x2d8   : > { %v677_v30 = vpop.f32.mrf.mxu1 }
 0x2d9   : > { %720 = vst [vmem:[%s1613_s24 + $0x78] sm:$0xff] %v704_v28  ;;  %v702_v31 = vmul.f32 %v1129_v29, %v677_v30 }
 0x2db   : > { %718 = vst [vmem:[%s1613_s24 + $0x68] sm:$0xff] %v702_v31 }
 0x2dc   : > { %1227 = shalt.err (!%p1224_p12)
}
 0x2dd   : > { %s1228_s8 = scalar_lea.hbm %s1634_s16, 2048  ;;  %s1232_s4 = scalar_lea.hbm %s1689_s3, 4096 }
 0x2de   : > { %p1229_p1 = scmp.ne.s32.totalorder %s1634_s16, %s1228_s8  ;;  %p1233_p6 = scmp.lt.s32.totalorder %s1634_s16, %s1689_s3 }
 0x2df   : > { %p1234_p7 = scmp.lt.s32.totalorder %s1232_s4, %s1228_s8 }
 0x2e0   : > { %p1230_p2 = pnand %p1229_p1, %p1383_p9 }
 0x2e1   : > { %p1235_p8 = por %p1234_p7, %p1233_p6 }
 0x2e2   : > { %p1231_p5 = pneg %p1230_p2 }
 0x2e4   : > { %p1236_p0 = pnand %p1235_p8, %p1231_p5 }
 0x2e6   : > { %1239 = shalt.err (!%p1236_p0)
}
 0x2e7   : > { %s1306_s20 = smov 128   ;;  %s1307_s30 = smov 8  }
 0x2e8   : > { %996 = dma.vmem_to_hbm [thread:$0]  (%p1383_p9), %s1636_s7, 2048, %s1634_s16, %s722_s15, %s1306_s20, %s1306_s20, %s1307_s30  }
 0x2e9 PF: > { %s752_s11 = sand.u32 1, %s1278_s12   ;;  %p1708_p3 = scmp.ge.s32.totalorder %s1298_s17, 2 }
 0x2ea   : > { %s753_s18 = scalar_lea.sflag [#allocation4], %s752_s11 }
 0x2eb   : > { %p1009_p4 = pnand %p1708_p3, %p1390_p11 }
 0x2ed   : > { %p1010_p10 = pneg %p1009_p4 }
 0x2ef   : > { %1273 = dma.done.wait (%p1010_p10), %s753_s18, 2048  }
 0x2f0   : > { %1275 = vsyncadd (%p1010_p10), %s753_s18, 4294965248  ;;  %s22_s17 = sadd.s32 1, %s1298_s17   ;;  %s1709_s25 = sld [smem:[#allocation14_spill]] }
 0x2f1   : > { %p19_p13 = scmp.ge.s32.totalorder %s22_s17, 4   ;;  %s1710_s15 = sld [smem:[#allocation12_spill]] }
 0x2f2   : > { %s1711_s16 = sld [smem:[#allocation13_spill]]  ;;  %s1712_s12 = smov %s1282_s13 }
 0x2f3   : > { %s1713_s13 = smov %s1286_s14  ;;  %21 = sbr.rel (!%p19_p13) target bundleno = 10 (0xa), region = 101 }
 0x2f6   : > { %s1714_s14 = smov %s1709_s25 }
 0x2f8   :  { %758 = vsyncpa [#allocation3], 1 }
 0x2f9   :  { %760 = vsyncpa [#allocation3 + $0x1], 1 }
 0x2fa   :  { %761 = vsyncpa [#allocation6], 1 }
 0x2fb   :  { %763 = vsyncpa [#allocation6 + $0x1], 1 }
 0x2fc   :  { %764 = vsyncpa [#allocation4], 1 }
 0x2fd   :  { %766 = vsyncpa [#allocation4 + $0x1], 1 }

</bundles_post_ra>
